<compile_context>
chip_gen: v6e
topology: v6e:2x2x1
jax: 0.10.0
libtpu: 0.0.40
codegen_flags: <defaults>
</compile_context>

<pallas_src>
import jax
import jax.numpy as jnp
from jax.experimental import pallas as pl
from jax.experimental.pallas import tpu as pltpu

ZDIM = 4
H1, H2, H3 = 32, 64, 128
OUT = 135
HEAD_W = 384             # [mu(135) | sd(135) | pad(114)] -> 3 * 128 lanes
NP_ROWS = 10             # rows in the packed small-parameter buffer
LN_EPS = 1e-5
MAX_BLOCK_B = 2048       # largest batch tile
SPLIT_MIN_B = 256        # above this, force >=2 grid steps (v7x megacore)
VMEM_LIMIT_BYTES = 32 * 1024 * 1024


def _round_up(n, m):
    return ((n + m - 1) // m) * m


def _choose_tiling(B):
    """Balanced batch tiling: near-equal blocks, <8 rows padding per block."""
    nb = pl.cdiv(B, MAX_BLOCK_B)
    if B > SPLIT_MIN_B and nb < 2:
        nb = 2                      # let both v7x TensorCores get work
    bt = _round_up(pl.cdiv(B, nb), 8)
    b_pad = nb * bt
    return nb, bt, b_pad


def _layernorm(h, gamma, beta, inv_f):
    # One-pass mean / E[x^2]: the two cross-lane (XLU) reductions are
    # independent, shortening the serial XLU->VPU critical path.
    s1 = jnp.sum(h, axis=-1, keepdims=True)
    s2 = jnp.sum(h * h, axis=-1, keepdims=True)
    mean = s1 * inv_f
    var = s2 * inv_f - mean * mean
    return (h - mean) * jax.lax.rsqrt(var + LN_EPS) * gamma + beta


def _softplus(x):
    # Numerically stable softplus (matches F.softplus semantics).
    return jnp.maximum(x, 0.0) + jnp.log1p(jnp.exp(-jnp.abs(x)))


def decoder_kernel(x_ref, w1_ref, w2_ref, w3_ref, wh_ref, p_ref,
                   mu_ref, sd_ref):
    x = x_ref[...]          # (bt, 4)
    w1 = w1_ref[...]        # (4, 32)

    # ---- Block 1: Linear(4, 32) on the VPU (K=4 would under-fill the MXU) --
    h = p_ref[0:1, :H1] + x[:, 0:1] * w1[0:1, :]
    for k in range(1, ZDIM):
        h = h + x[:, k:k + 1] * w1[k:k + 1, :]
    h = jnp.maximum(h, 0.0)
    h = _layernorm(h, p_ref[1:2, :H1], p_ref[2:3, :H1], 1.0 / H1)

    # ---- Block 2: Linear(32, 64) -> ReLU -> LayerNorm(64) -----------------
    h = jnp.dot(h, w2_ref[...], preferred_element_type=jnp.float32) + p_ref[3:4, :H2]
    h = jnp.maximum(h, 0.0)
    h = _layernorm(h, p_ref[4:5, :H2], p_ref[5:6, :H2], 1.0 / H2)

    # ---- Block 3: Linear(64, 128) -> ReLU -> LayerNorm(128) ---------------
    h = jnp.dot(h, w3_ref[...], preferred_element_type=jnp.float32) + p_ref[6:7, :H3]
    h = jnp.maximum(h, 0.0)
    h = _layernorm(h, p_ref[7:8, :H3], p_ref[8:9, :H3], 1.0 / H3)

    # ---- Fused heads: one (128, 384) matmul, [mu | sd | pad] ---------------
    head = jnp.dot(h, wh_ref[...], preferred_element_type=jnp.float32) + p_ref[9:10, :]
    mu_ref[...] = head[:, :OUT]
    sd_ref[...] = _softplus(head[:, OUT:2 * OUT])


def pack_params(params):
    """Pack weights/params into the kernel's 5 parameter arrays (call ONCE)."""
    (w1, b1, g1, be1,
     w2, b2, g2, be2,
     w3, b3, g3, be3,
     wmu, bmu, wsd, bsd) = params

    def row(v):
        v = v.reshape(-1)
        return jnp.pad(v, (0, HEAD_W - v.shape[0]))

    head_bias = jnp.concatenate([
        bmu.reshape(-1), bsd.reshape(-1),
        jnp.zeros((HEAD_W - 2 * OUT,), jnp.float32),
    ])
    packed = jnp.stack([
        row(b1), row(g1), row(be1),
        row(b2), row(g2), row(be2),
        row(b3), row(g3), row(be3),
        head_bias,
    ])  # (NP_ROWS, HEAD_W)

    w_head = jnp.concatenate([
        wmu, wsd, jnp.zeros((H3, HEAD_W - 2 * OUT), jnp.float32)
    ], axis=1)  # (128, 384)

    return (w1.astype(jnp.float32), w2.astype(jnp.float32),
            w3.astype(jnp.float32), w_head.astype(jnp.float32),
            packed.astype(jnp.float32))


@jax.jit
def decoder_forward(x, w1, w2, w3, w_head, packed):
    """Forward pass; takes pre-packed params (pack_params done once, outside)."""
    B = x.shape[0]
    nb, bt, b_pad = _choose_tiling(B)
    if b_pad != B:
        x = jnp.pad(x, ((0, b_pad - B), (0, 0)))

    cost = pl.CostEstimate(
        flops=2 * b_pad * (ZDIM * H1 + H1 * H2 + H2 * H3 + H3 * HEAD_W),
        transcendentals=2 * b_pad * OUT + 3 * b_pad,
        bytes_accessed=4 * (b_pad * ZDIM + 2 * b_pad * OUT
                            + ZDIM * H1 + H1 * H2 + H2 * H3
                            + H3 * HEAD_W + NP_ROWS * HEAD_W),
    )

    mu, sd = pl.pallas_call(
        decoder_kernel,
        out_shape=(jax.ShapeDtypeStruct((b_pad, OUT), jnp.float32),
                   jax.ShapeDtypeStruct((b_pad, OUT), jnp.float32)),
        grid_spec=pltpu.PrefetchScalarGridSpec(
            num_scalar_prefetch=0,
            grid=(nb,),
            in_specs=[
                pl.BlockSpec((bt, ZDIM), lambda i: (i, 0)),         # x tile
                pl.BlockSpec((ZDIM, H1), lambda i: (0, 0)),         # w1 (resident)
                pl.BlockSpec((H1, H2), lambda i: (0, 0)),           # w2 (resident)
                pl.BlockSpec((H2, H3), lambda i: (0, 0)),           # w3 (resident)
                pl.BlockSpec((H3, HEAD_W), lambda i: (0, 0)),       # fused head W
                pl.BlockSpec((NP_ROWS, HEAD_W), lambda i: (0, 0)),  # packed params
            ],
            out_specs=[
                pl.BlockSpec((bt, OUT), lambda i: (i, 0)),          # mu
                pl.BlockSpec((bt, OUT), lambda i: (i, 0)),          # sd
            ],
        ),
        compiler_params=pltpu.CompilerParams(
            dimension_semantics=("parallel",),
            vmem_limit_bytes=VMEM_LIMIT_BYTES),
        cost_estimate=cost,
    )(x, w1, w2, w3, w_head, packed)

    if b_pad != B:
        mu = mu[:B]
        sd = sd[:B]
    return mu, sd


def make_params(key):
    """Deterministic synthetic parameters matching the module's shapes."""
    ks = jax.random.split(key, 10)

    def lin(k, fin, fout):
        kw, kb = jax.random.split(k)
        w = jax.random.normal(kw, (fin, fout), jnp.float32) * 0.1
        b = jax.random.normal(kb, (1, fout), jnp.float32) * 0.05
        return w, b

    w1, b1 = lin(ks[0], ZDIM, H1)
    w2, b2 = lin(ks[1], H1, H2)
    w3, b3 = lin(ks[2], H2, H3)
    wmu, bmu = lin(ks[3], H3, OUT)
    wsd, bsd = lin(ks[4], H3, OUT)

    g1 = 1.0 + 0.1 * jax.random.normal(ks[5], (1, H1), jnp.float32)
    be1 = 0.1 * jax.random.normal(ks[6], (1, H1), jnp.float32)
    g2 = 1.0 + 0.1 * jax.random.normal(ks[7], (1, H2), jnp.float32)
    be2 = 0.1 * jax.random.normal(ks[8], (1, H2), jnp.float32)
    g3 = 1.0 + 0.1 * jax.random.normal(ks[9], (1, H3), jnp.float32)
    be3 = jnp.zeros((1, H3), jnp.float32)

    return (
        w1, b1, g1, be1,
        w2, b2, g2, be2,
        w3, b3, g3, be3,
        wmu, bmu,
        wsd, bsd,
    )


def _layernorm_ref(h, gamma, beta):
    # PyTorch nn.LayerNorm semantics: biased variance, eps=1e-5.
    mean = jnp.mean(h, axis=-1, keepdims=True)
    var = jnp.mean((h - mean) ** 2, axis=-1, keepdims=True)
    return (h - mean) * jax.lax.rsqrt(var + LN_EPS) * gamma + beta


def decoder_reference(x, params):
    (w1, b1, g1, be1, w2, b2, g2, be2, w3, b3, g3, be3,
     wmu, bmu, wsd, bsd) = params
    h = jnp.maximum(x @ w1 + b1, 0.0)
    h = _layernorm_ref(h, g1, be1)
    h = jnp.maximum(h @ w2 + b2, 0.0)
    h = _layernorm_ref(h, g2, be2)
    h = jnp.maximum(h @ w3 + b3, 0.0)
    h = _layernorm_ref(h, g3, be3)
    mu = h @ wmu + bmu
    sd = jax.nn.softplus(h @ wsd + bsd)
    return mu, sd


if __name__ == "__main__":
    key = jax.random.PRNGKey(0)
    k_x, k_p, k_x2 = jax.random.split(key, 3)

    params = make_params(k_p)
    packed = pack_params(params)   # hoisted: packed once, reused across calls

    # ---- Small batch (decode-style) ----------------------------------------
    B = 8
    x = jax.random.normal(k_x, (B, ZDIM), jnp.float32)
    mu, sd = decoder_forward(x, *packed)
    jax.block_until_ready((mu, sd))

    mu_ref, sd_ref = decoder_reference(x, params)
    assert mu.shape == (B, OUT) and sd.shape == (B, OUT)
    assert jnp.allclose(mu, mu_ref, atol=1e-4, rtol=1e-4)
    assert jnp.allclose(sd, sd_ref, atol=1e-4, rtol=1e-4)
    assert bool(jnp.all(sd > 0.0))  # softplus output is strictly positive

    # ---- Larger, non-multiple-of-8 batch: exercises balanced 2-step tiling,
    #      batch padding, and the megacore "parallel" grid axis. --------------
    B2 = 300
    x2 = jax.random.normal(k_x2, (B2, ZDIM), jnp.float32)
    mu2, sd2 = decoder_forward(x2, *packed)
    jax.block_until_ready((mu2, sd2))

    mu2_ref, sd2_ref = decoder_reference(x2, params)
    assert mu2.shape == (B2, OUT) and sd2.shape == (B2, OUT)
    assert jnp.allclose(mu2, mu2_ref, atol=1e-4, rtol=1e-4)
    assert jnp.allclose(sd2, sd2_ref, atol=1e-4, rtol=1e-4)
    assert bool(jnp.all(sd2 > 0.0))

    print("KERNEL_OK")
</pallas_src>

<mosaic_0001>
module attributes {stable_mosaic.version = 11 : i64} {
  func.func @decoder_kernel(%arg0: i32, %arg1: memref<8x4xf32, #tpu.memory_space<vmem>>, %arg2: memref<4x32xf32, #tpu.memory_space<vmem>>, %arg3: memref<32x64xf32, #tpu.memory_space<vmem>>, %arg4: memref<64x128xf32, #tpu.memory_space<vmem>>, %arg5: memref<128x384xf32, #tpu.memory_space<vmem>>, %arg6: memref<10x384xf32, #tpu.memory_space<vmem>>, %arg7: memref<8x135xf32, #tpu.memory_space<vmem>>, %arg8: memref<8x135xf32, #tpu.memory_space<vmem>>) attributes {dimension_semantics = [#tpu.dimension_semantics<parallel>], iteration_bounds = array<i64: 1>, scalar_prefetch = 0 : i64, scratch_operands = 0 : i64, tpu.core_type = #tpu.core_type<tc>, window_params = [{transform_indices = @transform_0, window_bounds = array<i64: 8, 4>}, {pipeline_mode = #tpu.pipeline_mode<synchronous>, transform_indices = @transform_1, window_bounds = array<i64: 4, 32>}, {pipeline_mode = #tpu.pipeline_mode<synchronous>, transform_indices = @transform_2, window_bounds = array<i64: 32, 64>}, {pipeline_mode = #tpu.pipeline_mode<synchronous>, transform_indices = @transform_3, window_bounds = array<i64: 64, 128>}, {pipeline_mode = #tpu.pipeline_mode<synchronous>, transform_indices = @transform_4, window_bounds = array<i64: 128, 384>}, {pipeline_mode = #tpu.pipeline_mode<synchronous>, transform_indices = @transform_5, window_bounds = array<i64: 10, 384>}, {transform_indices = @transform_6, window_bounds = array<i64: 8, 135>}, {transform_indices = @transform_7, window_bounds = array<i64: 8, 135>}]} {
    %c0 = arith.constant 0 : index
    %c0_0 = arith.constant 0 : index
    %0 = vector.load %arg1[%c0, %c0_0] : memref<8x4xf32, #tpu.memory_space<vmem>>, vector<8x4xf32>
    %c0_1 = arith.constant 0 : index
    %c0_2 = arith.constant 0 : index
    %1 = vector.load %arg2[%c0_1, %c0_2] : memref<4x32xf32, #tpu.memory_space<vmem>>, vector<4x32xf32>
    %c0_3 = arith.constant 0 : index
    %c0_4 = arith.constant 0 : index
    %2 = vector.load %arg6[%c0_3, %c0_4] : memref<10x384xf32, #tpu.memory_space<vmem>>, vector<1x32xf32>
    %3 = vector.extract_strided_slice %0 {offsets = [0, 0], sizes = [8, 1], strides = [1, 1]} : vector<8x4xf32> to vector<8x1xf32>
    %4 = vector.extract_strided_slice %1 {offsets = [0, 0], sizes = [1, 32], strides = [1, 1]} : vector<4x32xf32> to vector<1x32xf32>
    %5 = vector.broadcast %3 : vector<8x1xf32> to vector<8x32xf32>
    %6 = vector.broadcast %4 : vector<1x32xf32> to vector<8x32xf32>
    %7 = arith.mulf %5, %6 : vector<8x32xf32>
    %8 = vector.broadcast %2 : vector<1x32xf32> to vector<8x32xf32>
    %9 = arith.addf %8, %7 : vector<8x32xf32>
    %10 = vector.extract_strided_slice %0 {offsets = [0, 1], sizes = [8, 1], strides = [1, 1]} : vector<8x4xf32> to vector<8x1xf32>
    %11 = vector.extract_strided_slice %1 {offsets = [1, 0], sizes = [1, 32], strides = [1, 1]} : vector<4x32xf32> to vector<1x32xf32>
    %12 = vector.broadcast %10 : vector<8x1xf32> to vector<8x32xf32>
    %13 = vector.broadcast %11 : vector<1x32xf32> to vector<8x32xf32>
    %14 = arith.mulf %12, %13 : vector<8x32xf32>
    %15 = arith.addf %9, %14 : vector<8x32xf32>
    %16 = vector.extract_strided_slice %0 {offsets = [0, 2], sizes = [8, 1], strides = [1, 1]} : vector<8x4xf32> to vector<8x1xf32>
    %17 = vector.extract_strided_slice %1 {offsets = [2, 0], sizes = [1, 32], strides = [1, 1]} : vector<4x32xf32> to vector<1x32xf32>
    %18 = vector.broadcast %16 : vector<8x1xf32> to vector<8x32xf32>
    %19 = vector.broadcast %17 : vector<1x32xf32> to vector<8x32xf32>
    %20 = arith.mulf %18, %19 : vector<8x32xf32>
    %21 = arith.addf %15, %20 : vector<8x32xf32>
    %22 = vector.extract_strided_slice %0 {offsets = [0, 3], sizes = [8, 1], strides = [1, 1]} : vector<8x4xf32> to vector<8x1xf32>
    %23 = vector.extract_strided_slice %1 {offsets = [3, 0], sizes = [1, 32], strides = [1, 1]} : vector<4x32xf32> to vector<1x32xf32>
    %24 = vector.broadcast %22 : vector<8x1xf32> to vector<8x32xf32>
    %25 = vector.broadcast %23 : vector<1x32xf32> to vector<8x32xf32>
    %26 = arith.mulf %24, %25 : vector<8x32xf32>
    %27 = arith.addf %21, %26 : vector<8x32xf32>
    %cst = arith.constant 0.000000e+00 : f32
    %28 = vector.broadcast %cst : f32 to vector<8x32xf32>
    %29 = arith.maximumf %27, %28 : vector<8x32xf32>
    %c1 = arith.constant 1 : index
    %c0_5 = arith.constant 0 : index
    %30 = vector.load %arg6[%c1, %c0_5] : memref<10x384xf32, #tpu.memory_space<vmem>>, vector<1x32xf32>
    %c2 = arith.constant 2 : index
    %c0_6 = arith.constant 0 : index
    %31 = vector.load %arg6[%c2, %c0_6] : memref<10x384xf32, #tpu.memory_space<vmem>>, vector<1x32xf32>
    %cst_7 = arith.constant dense<0.000000e+00> : vector<8xf32>
    %32 = vector.multi_reduction <add>, %29, %cst_7 [1] : vector<8x32xf32> to vector<8xf32>
    %33 = vector.shape_cast %32 : vector<8xf32> to vector<8x1xf32>
    %34 = arith.mulf %29, %29 : vector<8x32xf32>
    %cst_8 = arith.constant dense<0.000000e+00> : vector<8xf32>
    %35 = vector.multi_reduction <add>, %34, %cst_8 [1] : vector<8x32xf32> to vector<8xf32>
    %36 = vector.shape_cast %35 : vector<8xf32> to vector<8x1xf32>
    %cst_9 = arith.constant 3.125000e-02 : f32
    %37 = vector.broadcast %cst_9 : f32 to vector<8x1xf32>
    %38 = arith.mulf %33, %37 : vector<8x1xf32>
    %cst_10 = arith.constant 3.125000e-02 : f32
    %39 = vector.broadcast %cst_10 : f32 to vector<8x1xf32>
    %40 = arith.mulf %36, %39 : vector<8x1xf32>
    %41 = arith.mulf %38, %38 : vector<8x1xf32>
    %42 = arith.subf %40, %41 : vector<8x1xf32>
    %43 = vector.broadcast %38 : vector<8x1xf32> to vector<8x32xf32>
    %44 = arith.subf %29, %43 : vector<8x32xf32>
    %cst_11 = arith.constant 9.99999974E-6 : f32
    %45 = vector.broadcast %cst_11 : f32 to vector<8x1xf32>
    %46 = arith.addf %42, %45 : vector<8x1xf32>
    %47 = math.rsqrt %46 : vector<8x1xf32>
    %48 = vector.broadcast %47 : vector<8x1xf32> to vector<8x32xf32>
    %49 = arith.mulf %44, %48 : vector<8x32xf32>
    %50 = vector.broadcast %30 : vector<1x32xf32> to vector<8x32xf32>
    %51 = arith.mulf %49, %50 : vector<8x32xf32>
    %52 = vector.broadcast %31 : vector<1x32xf32> to vector<8x32xf32>
    %53 = arith.addf %51, %52 : vector<8x32xf32>
    %c0_12 = arith.constant 0 : index
    %c0_13 = arith.constant 0 : index
    %54 = vector.load %arg3[%c0_12, %c0_13] : memref<32x64xf32, #tpu.memory_space<vmem>>, vector<32x64xf32>
    %cst_14 = arith.constant dense<0.000000e+00> : vector<8x64xf32>
    %55 = tpu.matmul %53, %54, %cst_14 {dimension_numbers = #tpu.dot_dimension_numbers<[1], [0], [0], [1], [0, 0, 1, 1], [], []>} : vector<8x32xf32>, vector<32x64xf32>, vector<8x64xf32> -> vector<8x64xf32>
    %c3 = arith.constant 3 : index
    %c0_15 = arith.constant 0 : index
    %56 = vector.load %arg6[%c3, %c0_15] : memref<10x384xf32, #tpu.memory_space<vmem>>, vector<1x64xf32>
    %57 = vector.broadcast %56 : vector<1x64xf32> to vector<8x64xf32>
    %58 = arith.addf %55, %57 : vector<8x64xf32>
    %cst_16 = arith.constant 0.000000e+00 : f32
    %59 = vector.broadcast %cst_16 : f32 to vector<8x64xf32>
    %60 = arith.maximumf %58, %59 : vector<8x64xf32>
    %c4 = arith.constant 4 : index
    %c0_17 = arith.constant 0 : index
    %61 = vector.load %arg6[%c4, %c0_17] : memref<10x384xf32, #tpu.memory_space<vmem>>, vector<1x64xf32>
    %c5 = arith.constant 5 : index
    %c0_18 = arith.constant 0 : index
    %62 = vector.load %arg6[%c5, %c0_18] : memref<10x384xf32, #tpu.memory_space<vmem>>, vector<1x64xf32>
    %cst_19 = arith.constant dense<0.000000e+00> : vector<8xf32>
    %63 = vector.multi_reduction <add>, %60, %cst_19 [1] : vector<8x64xf32> to vector<8xf32>
    %64 = vector.shape_cast %63 : vector<8xf32> to vector<8x1xf32>
    %65 = arith.mulf %60, %60 : vector<8x64xf32>
    %cst_20 = arith.constant dense<0.000000e+00> : vector<8xf32>
    %66 = vector.multi_reduction <add>, %65, %cst_20 [1] : vector<8x64xf32> to vector<8xf32>
    %67 = vector.shape_cast %66 : vector<8xf32> to vector<8x1xf32>
    %cst_21 = arith.constant 1.562500e-02 : f32
    %68 = vector.broadcast %cst_21 : f32 to vector<8x1xf32>
    %69 = arith.mulf %64, %68 : vector<8x1xf32>
    %cst_22 = arith.constant 1.562500e-02 : f32
    %70 = vector.broadcast %cst_22 : f32 to vector<8x1xf32>
    %71 = arith.mulf %67, %70 : vector<8x1xf32>
    %72 = arith.mulf %69, %69 : vector<8x1xf32>
    %73 = arith.subf %71, %72 : vector<8x1xf32>
    %74 = vector.broadcast %69 : vector<8x1xf32> to vector<8x64xf32>
    %75 = arith.subf %60, %74 : vector<8x64xf32>
    %cst_23 = arith.constant 9.99999974E-6 : f32
    %76 = vector.broadcast %cst_23 : f32 to vector<8x1xf32>
    %77 = arith.addf %73, %76 : vector<8x1xf32>
    %78 = math.rsqrt %77 : vector<8x1xf32>
    %79 = vector.broadcast %78 : vector<8x1xf32> to vector<8x64xf32>
    %80 = arith.mulf %75, %79 : vector<8x64xf32>
    %81 = vector.broadcast %61 : vector<1x64xf32> to vector<8x64xf32>
    %82 = arith.mulf %80, %81 : vector<8x64xf32>
    %83 = vector.broadcast %62 : vector<1x64xf32> to vector<8x64xf32>
    %84 = arith.addf %82, %83 : vector<8x64xf32>
    %c0_24 = arith.constant 0 : index
    %c0_25 = arith.constant 0 : index
    %85 = vector.load %arg4[%c0_24, %c0_25] : memref<64x128xf32, #tpu.memory_space<vmem>>, vector<64x128xf32>
    %cst_26 = arith.constant dense<0.000000e+00> : vector<8x128xf32>
    %86 = tpu.matmul %84, %85, %cst_26 {dimension_numbers = #tpu.dot_dimension_numbers<[1], [0], [0], [1], [0, 0, 1, 1], [], []>} : vector<8x64xf32>, vector<64x128xf32>, vector<8x128xf32> -> vector<8x128xf32>
    %c6 = arith.constant 6 : index
    %c0_27 = arith.constant 0 : index
    %87 = vector.load %arg6[%c6, %c0_27] : memref<10x384xf32, #tpu.memory_space<vmem>>, vector<1x128xf32>
    %88 = vector.broadcast %87 : vector<1x128xf32> to vector<8x128xf32>
    %89 = arith.addf %86, %88 : vector<8x128xf32>
    %cst_28 = arith.constant 0.000000e+00 : f32
    %90 = vector.broadcast %cst_28 : f32 to vector<8x128xf32>
    %91 = arith.maximumf %89, %90 : vector<8x128xf32>
    %c7 = arith.constant 7 : index
    %c0_29 = arith.constant 0 : index
    %92 = vector.load %arg6[%c7, %c0_29] : memref<10x384xf32, #tpu.memory_space<vmem>>, vector<1x128xf32>
    %c8 = arith.constant 8 : index
    %c0_30 = arith.constant 0 : index
    %93 = vector.load %arg6[%c8, %c0_30] : memref<10x384xf32, #tpu.memory_space<vmem>>, vector<1x128xf32>
    %cst_31 = arith.constant dense<0.000000e+00> : vector<8xf32>
    %94 = vector.multi_reduction <add>, %91, %cst_31 [1] : vector<8x128xf32> to vector<8xf32>
    %95 = vector.shape_cast %94 : vector<8xf32> to vector<8x1xf32>
    %96 = arith.mulf %91, %91 : vector<8x128xf32>
    %cst_32 = arith.constant dense<0.000000e+00> : vector<8xf32>
    %97 = vector.multi_reduction <add>, %96, %cst_32 [1] : vector<8x128xf32> to vector<8xf32>
    %98 = vector.shape_cast %97 : vector<8xf32> to vector<8x1xf32>
    %cst_33 = arith.constant 7.812500e-03 : f32
    %99 = vector.broadcast %cst_33 : f32 to vector<8x1xf32>
    %100 = arith.mulf %95, %99 : vector<8x1xf32>
    %cst_34 = arith.constant 7.812500e-03 : f32
    %101 = vector.broadcast %cst_34 : f32 to vector<8x1xf32>
    %102 = arith.mulf %98, %101 : vector<8x1xf32>
    %103 = arith.mulf %100, %100 : vector<8x1xf32>
    %104 = arith.subf %102, %103 : vector<8x1xf32>
    %105 = vector.broadcast %100 : vector<8x1xf32> to vector<8x128xf32>
    %106 = arith.subf %91, %105 : vector<8x128xf32>
    %cst_35 = arith.constant 9.99999974E-6 : f32
    %107 = vector.broadcast %cst_35 : f32 to vector<8x1xf32>
    %108 = arith.addf %104, %107 : vector<8x1xf32>
    %109 = math.rsqrt %108 : vector<8x1xf32>
    %110 = vector.broadcast %109 : vector<8x1xf32> to vector<8x128xf32>
    %111 = arith.mulf %106, %110 : vector<8x128xf32>
    %112 = vector.broadcast %92 : vector<1x128xf32> to vector<8x128xf32>
    %113 = arith.mulf %111, %112 : vector<8x128xf32>
    %114 = vector.broadcast %93 : vector<1x128xf32> to vector<8x128xf32>
    %115 = arith.addf %113, %114 : vector<8x128xf32>
    %c0_36 = arith.constant 0 : index
    %c0_37 = arith.constant 0 : index
    %116 = vector.load %arg5[%c0_36, %c0_37] : memref<128x384xf32, #tpu.memory_space<vmem>>, vector<128x384xf32>
    %cst_38 = arith.constant dense<0.000000e+00> : vector<8x384xf32>
    %117 = tpu.matmul %115, %116, %cst_38 {dimension_numbers = #tpu.dot_dimension_numbers<[1], [0], [0], [1], [0, 0, 1, 1], [], []>} : vector<8x128xf32>, vector<128x384xf32>, vector<8x384xf32> -> vector<8x384xf32>
    %c9 = arith.constant 9 : index
    %c0_39 = arith.constant 0 : index
    %118 = vector.load %arg6[%c9, %c0_39] : memref<10x384xf32, #tpu.memory_space<vmem>>, vector<1x384xf32>
    %119 = vector.broadcast %118 : vector<1x384xf32> to vector<8x384xf32>
    %120 = arith.addf %117, %119 : vector<8x384xf32>
    %121 = vector.extract_strided_slice %120 {offsets = [0, 0], sizes = [8, 135], strides = [1, 1]} : vector<8x384xf32> to vector<8x135xf32>
    %c0_40 = arith.constant 0 : index
    %c0_41 = arith.constant 0 : index
    %122 = vector.load %arg7[%c0_40, %c0_41] : memref<8x135xf32, #tpu.memory_space<vmem>>, vector<8x135xf32>
    tpu.vector_store %arg7[%c0_40, %c0_41], %121 {strides = array<i32>} : memref<8x135xf32, #tpu.memory_space<vmem>>, vector<8x135xf32>,
    %123 = vector.extract_strided_slice %120 {offsets = [0, 135], sizes = [8, 135], strides = [1, 1]} : vector<8x384xf32> to vector<8x135xf32>
    %cst_42 = arith.constant 0.000000e+00 : f32
    %124 = vector.broadcast %cst_42 : f32 to vector<8x135xf32>
    %125 = arith.maximumf %123, %124 : vector<8x135xf32>
    %126 = math.absf %123 : vector<8x135xf32>
    %cst_43 = arith.constant 0.000000e+00 : f32
    %127 = vector.broadcast %cst_43 : f32 to vector<8x135xf32>
    %128 = arith.subf %127, %126 : vector<8x135xf32>
    %129 = math.exp %128 : vector<8x135xf32>
    %130 = math.log1p %129 : vector<8x135xf32>
    %131 = arith.addf %125, %130 : vector<8x135xf32>
    %c0_44 = arith.constant 0 : index
    %c0_45 = arith.constant 0 : index
    %132 = vector.load %arg8[%c0_44, %c0_45] : memref<8x135xf32, #tpu.memory_space<vmem>>, vector<8x135xf32>
    tpu.vector_store %arg8[%c0_44, %c0_45], %131 {strides = array<i32>} : memref<8x135xf32, #tpu.memory_space<vmem>>, vector<8x135xf32>,
    return
  }
  func.func @transform_0(%arg0: i32) -> (i32, i32) {
    %c0_i32 = arith.constant 0 : i32
    %c0_i32_0 = arith.constant 0 : i32
    return %arg0, %c0_i32 : i32, i32
  }
  func.func @transform_1(%arg0: i32) -> (i32, i32) {
    %c0_i32 = arith.constant 0 : i32
    %c0_i32_0 = arith.constant 0 : i32
    %c0_i32_1 = arith.constant 0 : i32
    return %c0_i32, %c0_i32_0 : i32, i32
  }
  func.func @transform_2(%arg0: i32) -> (i32, i32) {
    %c0_i32 = arith.constant 0 : i32
    %c0_i32_0 = arith.constant 0 : i32
    %c0_i32_1 = arith.constant 0 : i32
    return %c0_i32, %c0_i32_0 : i32, i32
  }
  func.func @transform_3(%arg0: i32) -> (i32, i32) {
    %c0_i32 = arith.constant 0 : i32
    %c0_i32_0 = arith.constant 0 : i32
    %c0_i32_1 = arith.constant 0 : i32
    return %c0_i32, %c0_i32_0 : i32, i32
  }
  func.func @transform_4(%arg0: i32) -> (i32, i32) {
    %c0_i32 = arith.constant 0 : i32
    %c0_i32_0 = arith.constant 0 : i32
    %c0_i32_1 = arith.constant 0 : i32
    return %c0_i32, %c0_i32_0 : i32, i32
  }
  func.func @transform_5(%arg0: i32) -> (i32, i32) {
    %c0_i32 = arith.constant 0 : i32
    %c0_i32_0 = arith.constant 0 : i32
    %c0_i32_1 = arith.constant 0 : i32
    return %c0_i32, %c0_i32_0 : i32, i32
  }
  func.func @transform_6(%arg0: i32) -> (i32, i32) {
    %c0_i32 = arith.constant 0 : i32
    %c0_i32_0 = arith.constant 0 : i32
    return %arg0, %c0_i32 : i32, i32
  }
  func.func @transform_7(%arg0: i32) -> (i32, i32) {
    %c0_i32 = arith.constant 0 : i32
    %c0_i32_0 = arith.constant 0 : i32
    return %arg0, %c0_i32 : i32, i32
  }
}

</mosaic_0001>

<bundles_post_ra>
// kernel: decoder_forward.1
= control target key start
LH: loop header
LB: loop body
LE: loop exit
PB: predicated region body
PF: predicated region fallthrough
CT: control target
= control target key end

     0   :  { %13 = vsyncpa [#allocation3], 0  ;;  %s1041_s0 = inlined_call_operand.vmem [shape: f32[8,4], index: 0, kind: input, shape index: {}]   ;;  %s1042_s1 = inlined_call_operand.vmem [shape: f32[4,32], index: 1, kind: input, shape index: {}]   ;;  %s1043_s2 = inlined_call_operand.hbm [shape: f32[32,64], index: 2, kind: input, shape index: {}]   ;;  %s1044_s3 = inlined_call_operand.hbm [shape: f32[64,128], index: 3, kind: input, shape index: {}]   ;;  %s1045_s4 = inlined_call_operand.hbm [shape: f32[128,384], index: 4, kind: input, shape index: {}]   ;;  %s1046_s5 = inlined_call_operand.hbm [shape: f32[10,384], index: 5, kind: input, shape index: {}]   ;;  %s1047_s6 = inlined_call_operand.hbm [shape: f32[8,135], index: 6, kind: output, shape index: {0}]   ;;  %s1048_s7 = inlined_call_operand.hbm [shape: f32[8,135], index: 7, kind: output, shape index: {1}]  }
   0x1   :  { %14 = vsyncpa [#allocation6], 0 }
   0x2   :  { %15 = vsyncpa [#allocation9], 0 }
   0x3   :  { %16 = vsyncpa [#allocation4], 0 }
   0x4   :  { %17 = vsyncpa [#allocation12], 0  ;;  %s893_s24 = smov [#allocation5]   ;;  %s894_s26 = smov [#allocation2]  }
   0x5   :  { %s39_s25 = sshll.u32 %s893_s24, 4  ;;  %s27_s27 = sshll.u32 %s894_s26, 4  ;;  %s40_s25 = int_to_ptr.vmem [resolvable:$true] %s39_s25  ;;  %s28_s27 = int_to_ptr.vmem [resolvable:$true] %s27_s27 }
   0x6   :  { %s771_s28 = scalar_lea.vmem %s40_s25, 1024  ;;  %p776_p1 = scmp.lt.s32.totalorder %s40_s25, %s40_s25 }
   0x7   :  { %p772_p0 = scmp.ne.s32.totalorder %s40_s25, %s771_s28  ;;  %p777_p2 = scmp.lt.s32.totalorder %s771_s28, %s771_s28 }
   0x9   :  { %p778_p3 = por %p777_p2, %p776_p1 }
   0xb   :  { %p779_p4 = pnand %p778_p3, %p772_p0 }
   0xd   :  { %782 = shalt.err (!%p779_p4)
}
   0xe   :  { %s895_s29 = smov 128   ;;  %s896_s30 = smov 8  }
   0xf   :  { %45 = dma.hbm_to_vmem [thread:$0]  %s1044_s3, 1024, %s40_s25, [#allocation6], %s895_s29, %s895_s29, %s896_s30  }
  0x10   :  { %s791_s10 = scalar_lea.vmem %s28_s27, 512  ;;  %p796_p6 = scmp.lt.s32.totalorder %s28_s27, %s28_s27 }
  0x11   :  { %p792_p5 = scmp.ne.s32.totalorder %s28_s27, %s791_s10  ;;  %p797_p7 = scmp.lt.s32.totalorder %s791_s10, %s791_s10 }
  0x13   :  { %p798_p8 = por %p797_p7, %p796_p6 }
  0x15   :  { %p799_p9 = pnand %p798_p8, %p792_p5 }
  0x17   :  { %802 = shalt.err (!%p799_p9)
}
  0x18   :  { %33 = dma.hbm_to_vmem [thread:$0]  %s1043_s2, 512, %s28_s27, [#allocation3], %s895_s29, %s895_s29, %s896_s30  }
  0x19   :  { %s897_s13 = smov [#allocation7]  }
  0x1a   :  { %s51_s14 = sshll.u32 %s897_s13, 4  ;;  %s52_s14 = int_to_ptr.vmem [resolvable:$true] %s51_s14 }
  0x1b   :  { %s811_s15 = scalar_lea.vmem %s52_s14, 6144  ;;  %p816_p11 = scmp.lt.s32.totalorder %s52_s14, %s52_s14 }
  0x1c   :  { %p812_p10 = scmp.ne.s32.totalorder %s52_s14, %s811_s15  ;;  %p817_p12 = scmp.lt.s32.totalorder %s811_s15, %s811_s15 }
  0x1e   :  { %p818_p13 = por %p817_p12, %p816_p11 }
  0x20   :  { %p819_p0 = pnand %p818_p13, %p812_p10 }
  0x22   :  { %822 = shalt.err (!%p819_p0)
}
  0x23   :  { %s898_s3 = smov 384   ;;  %s899_s16 = smov 24  }
  0x24   :  { %57 = dma.hbm_to_vmem [thread:$0]  %s1045_s4, 6144, %s52_s14, [#allocation6], %s898_s3, %s898_s3, %s899_s16  }
  0x25   :  { %s900_s19 = smov [#allocation8]  }
  0x26   :  { %s63_s20 = sshll.u32 %s900_s19, 4  ;;  %s64_s20 = int_to_ptr.vmem [resolvable:$true] %s63_s20 }
  0x27   :  { %s831_s2 = scalar_lea.vmem %s64_s20, 768  ;;  %p836_p2 = scmp.lt.s32.totalorder %s64_s20, %s64_s20 }
  0x28   :  { %p832_p1 = scmp.ne.s32.totalorder %s64_s20, %s831_s2  ;;  %p837_p3 = scmp.lt.s32.totalorder %s831_s2, %s831_s2 }
  0x2a   :  { %p838_p4 = por %p837_p3, %p836_p2 }
  0x2c   :  { %p839_p5 = pnand %p838_p4, %p832_p1 }
  0x2e   :  { %842 = shalt.err (!%p839_p5)
}
  0x2f   :  { %69 = dma.hbm_to_vmem [thread:$0]  %s1046_s5, 768, %s64_s20, [#allocation9], %s898_s3, %s898_s3, %s899_s16  }
  0x30   :  { %883 = dma.done.wait [#allocation3], 512  }
  0x31   :  { %884 = vsyncadd [#allocation3], 4294966784 }
  0x32   :  { %885 = dma.done.wait [#allocation6], 7168  }
  0x33   :  { %886 = vsyncadd [#allocation6], 4294960128 }
  0x34   :  { %887 = dma.done.wait [#allocation9], 768  }
  0x35   :  { %888 = vsyncadd [#allocation9], 4294966528  ;;  %v901_v0 = vmov 0   ;;  %v902_v1 = vmov 2   ;;  %v82_v2 = vld [vmem:[%s1041_s0] sm:$0xff]  ;;  %v903_v3 = vmov 1   ;;  %v90_v5 = vlaneseq }
  0x36   :  { %744 = vset.pattern.permute.xlu0 %v901_v0  ;;  %746 = vset.pattern.permute.xlu1 %v902_v1  ;;  %v904_v4 = vmov 3   ;;  %v83_v8 = vld [vmem:[%s1042_s1] sm:$0xf]  ;;  %vm129_vm0 = vcmask 261120   ;;  %v150_v33 = vld [vmem:[#allocation2 + $0x18] sm:$0xff]  ;;  %v905_v34 = vmov 0.0  }
  0x37   :  { %87 = vperm.xlu0 %744, %v82_v2   ;;  %107 = vperm.xlu1 %746, %v82_v2   ;;  %v965_v6 = vshrl.u32 %v90_v5, 7  ;;  %v84_v17 = vld [vmem:[#allocation8] ss:$0 sm:$0xff]  ;;  %v149_v35 = vld [vmem:[#allocation2 + $0x10] sm:$0xff]  ;;  %vm906_vm1 = vmmov 0   ;;  %v148_v36 = vld [vmem:[#allocation2 + $0x8] sm:$0xff] }
  0x38   :  { %662 = vmatprep.subr.mxu0 %v905_v34  ;;  %670 = vmatprep.mubr.msk.f32.mxu0 %vm906_vm1, %v905_v34  ;;  %v147_v37 = vld [vmem:[#allocation2] sm:$0xff]  ;;  %vm228_vm2 = vcmask 523264   ;;  %v253_v60 = vld [vmem:[#allocation5 + $0x38] sm:$0xff]  ;;  %v252_v61 = vld [vmem:[#allocation5 + $0x30] sm:$0xff]  ;;  %vm554_vm3 = vcmask 56320   ;;  %s907_s0 = smov [#allocation10]  }
  0x39   :  { %v92_v7 = vsub.s32 0, %v965_v6  ;;  %v102_v10 = vsub.s32 1, %v965_v6  ;;  %v112_v12 = vsub.s32 2, %v965_v6  ;;  %v122_v14 = vsub.s32 3, %v965_v6  ;;  %663 = vmatpush3.msra.mxu0 %v150_v33  ;;  %673 = vmatprep.subr.mxu1 %v905_v34  ;;  %v127_v47 = vld [vmem:[#allocation8 + $0x1] ss:$0 sm:$0xff] }
  0x3a   :  { %664 = vmatprep.subr.mxu0 %v905_v34  ;;  %689 = vmatprep.mubr.msk.f32.mxu1 %vm906_vm1, %v905_v34  ;;  %v128_v49 = vld [vmem:[#allocation8 + $0x2] ss:$0 sm:$0xff]  ;;  %v151_v52 = vld [vmem:[#allocation8 + $0x3] ss:$0 sm:$0xff]  ;;  %v251_v62 = vld [vmem:[#allocation5 + $0x28] sm:$0xff]  ;;  %s604_s1 = sshll.u32 %s907_s0, 4  ;;  %s605_s1 = int_to_ptr.vmem [resolvable:$true] %s604_s1 }
  0x3b   :  { %745 = vset.pattern.permute.xlu0 %v903_v3  ;;  %747 = vset.pattern.permute.xlu1 %v904_v4  ;;  %v93_v9 = vrot.slane %v83_v8, %v92_v7  ;;  %v103_v16 = vrot.slane %v83_v8, %v102_v10  ;;  %v113_v18 = vrot.slane %v83_v8, %v112_v12  ;;  %v250_v63 = vld [vmem:[#allocation5 + $0x20] sm:$0xff]  ;;  %v249_v0 = vld [vmem:[#allocation5 + $0x18] sm:$0xff]  ;;  %v248_v1 = vld [vmem:[#allocation5 + $0x10] sm:$0xff]  ;;  %s843_s25 = scalar_lea.vmem %s605_s1, 256  ;;  %p848_p7 = scmp.lt.s32.totalorder %s605_s1, %s605_s1 }
  0x3c   :  { %97 = vperm.xlu0 %745, %v82_v2   ;;  %117 = vperm.xlu1 %747, %v82_v2   ;;  %v123_v19 = vrot.slane %v83_v8, %v122_v14  ;;  %v247_v2 = vld [vmem:[#allocation5 + $0x8] sm:$0xff]  ;;  %v246_v3 = vld [vmem:[#allocation5] sm:$0xff]  ;;  %p844_p6 = scmp.ne.s32.totalorder %s605_s1, %s843_s25  ;;  %p849_p8 = scmp.lt.s32.totalorder %s843_s25, %s843_s25 }
  0x3d   :  { %665 = vmatpush3.msra.mxu0 %v149_v35  ;;  %674 = vmatpush3.msra.mxu1 %v253_v60  ;;  %v386_v35 = vld [vmem:[#allocation7 + $0x140] sm:$0xff]  ;;  %v361_v60 = vld [vmem:[#allocation7 + $0x78] sm:$0xff] }
  0x3e   :  { %666 = vmatprep.subr.mxu0 %v905_v34  ;;  %675 = vmatprep.subr.mxu1 %v905_v34  ;;  %p850_p9 = por %p849_p8, %p848_p7 }
  0x3f   :  { %667 = vmatpush3.msra.mxu0 %v148_v36  ;;  %676 = vmatpush3.msra.mxu1 %v252_v61  ;;  %v385_v36 = vld [vmem:[#allocation7 + $0x138] sm:$0xff]  ;;  %v363_v61 = vld [vmem:[#allocation7 + $0x88] sm:$0xff] }
  0x40   :  { %748 = vset.pattern.permute.xlu0 %v904_v4  ;;  %668 = vmatprep.subr.mxu0 %v905_v34  ;;  %p851_p10 = pnand %p850_p9, %p844_p6 }
  0x41   :  { %669 = vmatpush3.msra.mxu0 %v147_v37  ;;  %677 = vmatprep.subr.mxu1 %v905_v34  ;;  %v387_v37 = vld [vmem:[#allocation7 + $0x148] sm:$0xff] }
  0x42   :  { %678 = vmatpush3.msra.mxu1 %v251_v62  ;;  %v359_v62 = vld [vmem:[#allocation7 + $0x68] sm:$0xff] }
  0x43   :  { %679 = vmatprep.subr.mxu1 %v905_v34 }
  0x44   :  { %680 = vmatpush3.msra.mxu1 %v250_v63  ;;  %v358_v63 = vld [vmem:[#allocation7 + $0x60] sm:$0xff] }
  0x45   :  { %681 = vmatprep.subr.mxu1 %v905_v34 }
  0x46   :  { %682 = vmatpush3.msra.mxu1 %v249_v0  ;;  %v360_v0 = vld [vmem:[#allocation7 + $0x70] sm:$0xff] }
  0x47   :  { %683 = vmatprep.subr.mxu1 %v905_v34 }
  0x48   :  { %684 = vmatpush3.msra.mxu1 %v248_v1  ;;  %v356_v1 = vld [vmem:[#allocation7 + $0x50] sm:$0xff] }
  0x49   :  { %685 = vmatprep.subr.mxu1 %v905_v34 }
  0x4a   :  { %686 = vmatpush3.msra.mxu1 %v247_v2  ;;  %v355_v2 = vld [vmem:[#allocation7 + $0x48] sm:$0xff] }
  0x4b   :  { %687 = vmatprep.subr.mxu1 %v905_v34 }
  0x4c   :  { %688 = vmatpush3.msra.mxu1 %v246_v3  ;;  %v357_v3 = vld [vmem:[#allocation7 + $0x58] sm:$0xff] }
  0x4d   :  { %692 = vmatprep.subr.mxu1 %v905_v34 }
  0xb2   :  { %v88_v11 = vpop.permute.xlu0 %87  ;;  %v108_v13 = vpop.permute.xlu1 %107 }
  0xb3   :  { %v94_v15 = vmul.f32 %v93_v9, %v88_v11  ;;  %v114_v24 = vmul.f32 %v113_v18, %v108_v13 }
  0xb5   :  { %v95_v22 = vadd.f32 %v94_v15, %v84_v17  ;;  %v226_v17 = vld [vmem:[#allocation8 + $0x4] ss:$0 sm:$0xff] }
  0xb7   :  { %v98_v20 = vpop.permute.xlu0 %97  ;;  %v118_v21 = vpop.permute.xlu1 %117 }
  0xb8   :  { %v104_v23 = vmul.f32 %v103_v16, %v98_v20  ;;  %v124_v26 = vmul.f32 %v123_v19, %v118_v21  ;;  %v227_v19 = vld [vmem:[#allocation8 + $0x5] ss:$0 sm:$0xff] }
  0xba   :  { %v105_v25 = vadd.f32 %v104_v23, %v95_v22  ;;  %v392_v22 = vld [vmem:[#allocation7 + $0x170] sm:$0xff]  ;;  %v391_v23 = vld [vmem:[#allocation7 + $0x168] sm:$0xff] }
  0xbb   :  { %412 = vmatprep.subr.mxu0 %v392_v22 }
  0xbc   :  { %v115_v27 = vadd.f32 %v114_v24, %v105_v25  ;;  %v393_v24 = vld [vmem:[#allocation7 + $0x178] sm:$0xff] }
  0xbd   :  { %v389_v25 = vld [vmem:[#allocation7 + $0x158] sm:$0xff] }
  0xbe   :  { %v125_v28 = vadd.f32 %v124_v26, %v115_v27  ;;  %v388_v26 = vld [vmem:[#allocation7 + $0x150] sm:$0xff]  ;;  %v390_v27 = vld [vmem:[#allocation7 + $0x160] sm:$0xff] }
  0xc0   :  { %v126_v29 = vmax.f32 %v125_v28, 0.0  ;;  %v254_v28 = vld [vmem:[#allocation8 + $0x6] ss:$0 sm:$0xff] }
  0xc2   :  { %v130_v30 = vsel %vm129_vm0, %v126_v29, 0.0  ;;  %v133_v31 = vmul.f32 %v126_v29, %v126_v29 }
  0xc3   :  { %131 = vadd.xlane.f32.xlu1 %v130_v30 }
  0xc4   :  { %v134_v32 = vsel %vm129_vm0, %v133_v31, 0.0 }
  0xc5   :  { %135 = vadd.xlane.f32.xlu0 %v134_v32 }
 0x14c   :  { %v132_v38 = vpop.xlane.xlu1 %131 }
 0x14d   :  { %v137_v39 = vmul.f32 0.03125, %v132_v38  ;;  %v383_v38 = vld [vmem:[#allocation7 + $0x128] sm:$0xff] }
 0x14e   :  { %v136_v40 = vpop.xlane.xlu0 %135 }
 0x14f   :  { %v139_v41 = vmul.f32 %v137_v39, %v137_v39  ;;  %v138_v42 = vmul.f32 0.03125, %v136_v40  ;;  %v141_v45 = vsub.f32 %v126_v29, %v137_v39  ;;  %v382_v39 = vld [vmem:[#allocation7 + $0x120] sm:$0xff]  ;;  %v384_v40 = vld [vmem:[#allocation7 + $0x130] sm:$0xff] }
 0x151   :  { %v140_v43 = vsub.f32 %v138_v42, %v139_v41  ;;  %v380_v41 = vld [vmem:[#allocation7 + $0x110] sm:$0xff]  ;;  %v379_v42 = vld [vmem:[#allocation7 + $0x108] sm:$0xff] }
 0x153   :  { %v142_v44 = vadd.f32 1e-05, %v140_v43  ;;  %v381_v43 = vld [vmem:[#allocation7 + $0x118] sm:$0xff] }
 0x155   :  { %749 = vrsqrt.f32 %v142_v44  ;;  %v377_v44 = vld [vmem:[#allocation7 + $0xf8] sm:$0xff] }
 0x162   :  { %v750_v46 = vpop.eup %749 }
 0x163   :  { %v144_v48 = vmul.f32 %v750_v46, %v141_v45  ;;  %v376_v45 = vld [vmem:[#allocation7 + $0xf0] sm:$0xff]  ;;  %v378_v46 = vld [vmem:[#allocation7 + $0x100] sm:$0xff] }
 0x165   :  { %v145_v50 = vmul.f32 %v144_v48, %v127_v47  ;;  %v374_v47 = vld [vmem:[#allocation7 + $0xe0] sm:$0xff]  ;;  %v373_v48 = vld [vmem:[#allocation7 + $0xd8] sm:$0xff] }
 0x167   :  { %v146_v51 = vadd.f32 %v145_v50, %v128_v49  ;;  %v375_v49 = vld [vmem:[#allocation7 + $0xe8] sm:$0xff] }
 0x168   :  { %v371_v50 = vld [vmem:[#allocation7 + $0xc8] sm:$0xff] }
 0x169   :  { %671 = vmatmul.mubr.msk.f32.vlgmr.msra.gmra.mxu0 %vm129_vm0, %v146_v51  ;;  %v370_v51 = vld [vmem:[#allocation7 + $0xc0] sm:$0xff] }
 0x16a   :  { %476 = vmatprep.mubr.f32.mxu0 %v905_v34  ;;  %413 = vmatpush1.msra.mxu0 %v391_v23 }
 0x16b   :  { %414 = vmatprep.subr.mxu0 %v389_v25 }
 0x16c   :  { %415 = vmatpush1.msra.mxu0 %v388_v26  ;;  %v329_v26 = vld [vmem:[#allocation8 + $0x7] ss:$0 sm:$0xff] }
 0x16d   :  { %416 = vmatprep.subr.mxu0 %v386_v35 }
 0x16e   :  { %417 = vmatpush1.msra.mxu0 %v385_v36 }
 0x16f   :  { %418 = vmatprep.subr.mxu0 %v383_v38 }
 0x170   :  { %419 = vmatpush1.msra.mxu0 %v382_v39 }
 0x171   :  { %420 = vmatprep.subr.mxu0 %v380_v41 }
 0x172   :  { %421 = vmatpush1.msra.mxu0 %v379_v42 }
 0x173   :  { %422 = vmatprep.subr.mxu0 %v377_v44 }
 0x174   :  { %423 = vmatpush1.msra.mxu0 %v376_v45 }
 0x175   :  { %424 = vmatprep.subr.mxu0 %v374_v47 }
 0x176   :  { %425 = vmatpush1.msra.mxu0 %v373_v48 }
 0x177   :  { %426 = vmatprep.subr.mxu0 %v371_v50 }
 0x178   :  { %427 = vmatpush1.msra.mxu0 %v370_v51 }
 0x229   :  { %v221_v53 = vpop.f32.mrf.mxu0 }
 0x22a   :  { %v222_v54 = vadd.f32 %v221_v53, %v151_v52  ;;  %v372_v52 = vld [vmem:[#allocation7 + $0xd0] sm:$0xff] }
 0x22b   :  { %v672_v55 = vpop.f32.mrf.mxu0  ;;  %v368_v53 = vld [vmem:[#allocation7 + $0xb0] sm:$0xff] }
 0x22c   :  { %v225_v56 = vmax.f32 %v222_v54, 0.0  ;;  %v367_v54 = vld [vmem:[#allocation7 + $0xa8] sm:$0xff]  ;;  %v369_v55 = vld [vmem:[#allocation7 + $0xb8] sm:$0xff]  ;;  %428 = vmatprep.subr.mxu0 %v368_v53 }
 0x22d   :  { %429 = vmatpush1.msra.mxu0 %v367_v54 }
 0x22e   :  { %v229_v57 = vsel %vm228_vm2, %v225_v56, 0.0  ;;  %v232_v58 = vmul.f32 %v225_v56, %v225_v56 }
 0x22f   :  { %230 = vadd.xlane.f32.xlu0 %v229_v57  ;;  %v364_v57 = vld [vmem:[#allocation7 + $0x90] sm:$0xff] }
 0x230   :  { %v233_v59 = vsel %vm228_vm2, %v232_v58, 0.0  ;;  %v366_v58 = vld [vmem:[#allocation7 + $0xa0] sm:$0xff] }
 0x231   :  { %234 = vadd.xlane.f32.xlu1 %v233_v59  ;;  %v362_v59 = vld [vmem:[#allocation7 + $0x80] sm:$0xff] }
 0x2b8   :  { %v231_v4 = vpop.xlane.xlu0 %230 }
 0x2b9   :  { %v236_v5 = vmul.f32 0.015625, %v231_v4  ;;  %v353_v4 = vld [vmem:[#allocation7 + $0x38] sm:$0xff] }
 0x2ba   :  { %v235_v8 = vpop.xlane.xlu1 %234 }
 0x2bb   :  { %v238_v9 = vmul.f32 %v236_v5, %v236_v5  ;;  %v237_v11 = vmul.f32 0.015625, %v235_v8  ;;  %v240_v15 = vsub.f32 %v225_v56, %v236_v5  ;;  %v365_v56 = vld [vmem:[#allocation7 + $0x98] sm:$0xff]  ;;  %v352_v5 = vld [vmem:[#allocation7 + $0x30] sm:$0xff]  ;;  %v354_v8 = vld [vmem:[#allocation7 + $0x40] sm:$0xff] }
 0x2bc   :  { %430 = vmatprep.subr.mxu0 %v365_v56 }
 0x2bd   :  { %v239_v13 = vsub.f32 %v237_v11, %v238_v9  ;;  %431 = vmatpush1.msra.mxu0 %v364_v57  ;;  %v350_v9 = vld [vmem:[#allocation7 + $0x20] sm:$0xff]  ;;  %v349_v11 = vld [vmem:[#allocation7 + $0x18] sm:$0xff] }
 0x2be   :  { %432 = vmatprep.subr.mxu0 %v362_v59 }
 0x2bf   :  { %v241_v14 = vadd.f32 1e-05, %v239_v13  ;;  %433 = vmatpush1.msra.mxu0 %v361_v60  ;;  %v351_v13 = vld [vmem:[#allocation7 + $0x28] sm:$0xff] }
 0x2c0   :  { %434 = vmatprep.subr.mxu0 %v359_v62 }
 0x2c1   :  { %751 = vrsqrt.f32 %v241_v14  ;;  %435 = vmatpush1.msra.mxu0 %v358_v63  ;;  %v347_v14 = vld [vmem:[#allocation7 + $0x8] sm:$0xff] }
 0x2c2   :  { %436 = vmatprep.subr.mxu0 %v356_v1 }
 0x2c3   :  { %437 = vmatpush1.msra.mxu0 %v355_v2 }
 0x2c4   :  { %438 = vmatprep.subr.mxu0 %v353_v4 }
 0x2c5   :  { %439 = vmatpush1.msra.mxu0 %v352_v5 }
 0x2c6   :  { %440 = vmatprep.subr.mxu0 %v350_v9 }
 0x2c7   :  { %441 = vmatpush1.msra.mxu0 %v349_v11 }
 0x2c8   :  { %442 = vmatprep.subr.mxu0 %v347_v14 }
 0x2ce   :  { %v752_v16 = vpop.eup %751 }
 0x2cf   :  { %v243_v18 = vmul.f32 %v752_v16, %v240_v15  ;;  %v346_v15 = vld [vmem:[#allocation7] sm:$0xff]  ;;  %v348_v16 = vld [vmem:[#allocation7 + $0x10] sm:$0xff] }
 0x2d0   :  { %443 = vmatpush1.msra.mxu0 %v346_v15 }
 0x2d1   :  { %v244_v20 = vmul.f32 %v243_v18, %v226_v17 }
 0x2d3   :  { %v245_v21 = vadd.f32 %v244_v20, %v227_v19 }
 0x2d5   :  { %690 = vmatmul.mubr.msk.f32.vlgmr.msra.gmra.mxu1 %vm228_vm2, %v245_v21 }
 0x2d6   :  { %724 = vmatprep.mubr.msk.f32.mxu1 %vm906_vm1, %v905_v34  ;;  %693 = vmatpush3.msra.mxu1 %v393_v24 }
 0x2d7   :  { %694 = vmatprep.subr.mxu1 %v905_v34 }
 0x2d8   :  { %695 = vmatpush3.msra.mxu1 %v390_v27 }
 0x2d9   :  { %696 = vmatprep.subr.mxu1 %v905_v34 }
 0x2da   :  { %697 = vmatpush3.msra.mxu1 %v387_v37 }
 0x2db   :  { %698 = vmatprep.subr.mxu1 %v905_v34 }
 0x2dc   :  { %699 = vmatpush3.msra.mxu1 %v384_v40 }
 0x2dd   :  { %700 = vmatprep.subr.mxu1 %v905_v34 }
 0x2de   :  { %701 = vmatpush3.msra.mxu1 %v381_v43 }
 0x2df   :  { %702 = vmatprep.subr.mxu1 %v905_v34 }
 0x2e0   :  { %703 = vmatpush3.msra.mxu1 %v378_v46 }
 0x2e1   :  { %704 = vmatprep.subr.mxu1 %v905_v34 }
 0x2e2   :  { %705 = vmatpush3.msra.mxu1 %v375_v49 }
 0x2e3   :  { %706 = vmatprep.subr.mxu1 %v905_v34 }
 0x2e4   :  { %707 = vmatpush3.msra.mxu1 %v372_v52 }
 0x2e5   :  { %708 = vmatprep.subr.mxu1 %v905_v34 }
 0x2e6   :  { %709 = vmatpush3.msra.mxu1 %v369_v55 }
 0x2e7   :  { %710 = vmatprep.subr.mxu1 %v905_v34 }
 0x2e8   :  { %711 = vmatpush3.msra.mxu1 %v366_v58 }
 0x2e9   :  { %712 = vmatprep.subr.mxu1 %v905_v34 }
 0x2ea   :  { %713 = vmatpush3.msra.mxu1 %v363_v61 }
 0x2eb   :  { %714 = vmatprep.subr.mxu1 %v905_v34 }
 0x2ec   :  { %715 = vmatpush3.msra.mxu1 %v360_v0 }
 0x2ed   :  { %716 = vmatprep.subr.mxu1 %v905_v34 }
 0x2ee   :  { %717 = vmatpush3.msra.mxu1 %v357_v3 }
 0x2ef   :  { %718 = vmatprep.subr.mxu1 %v905_v34 }
 0x2f0   :  { %719 = vmatpush3.msra.mxu1 %v354_v8 }
 0x2f1   :  { %720 = vmatprep.subr.mxu1 %v905_v34 }
 0x2f2   :  { %721 = vmatpush3.msra.mxu1 %v351_v13 }
 0x2f3   :  { %722 = vmatprep.subr.mxu1 %v905_v34  ;;  %v395_v34 = vld [vmem:[#allocation8 + $0x19] ss:$8 sm:$0x7] }
 0x2f4   :  { %723 = vmatpush3.msra.mxu1 %v348_v16  ;;  %v404_v35 = vrot.slane %v395_v34, %v102_v10 }
 0x395   :  { %v324_v29 = vpop.f32.mrf.mxu1 }
 0x396   :  { %v325_v30 = vadd.f32 %v324_v29, %v254_v28  ;;  %v330_v28 = vld [vmem:[#allocation8 + $0x18] ss:$0 sm:$0xff] }
 0x397   :  { %v691_v31 = vpop.f32.mrf.mxu1 }
 0x398   :  { %v1008_v32 = vmax.f32 %v325_v30, 0.0  ;;  %v400_v31 = vrot.slane %v395_v34, %v92_v7 }
 0x39a   :  { %331 = vadd.xlane.f32.xlu0 %v1008_v32  ;;  %v333_v33 = vmul.f32 %v1008_v32, %v1008_v32 }
 0x39c   :  { %334 = vadd.xlane.f32.xlu1 %v333_v33  ;;  %v408_v33 = vrot.slane %v395_v34, %v112_v12 }
 0x423   :  { %v332_v17 = vpop.xlane.xlu0 %331 }
 0x424   :  { %v336_v18 = vmul.f32 0.0078125, %v332_v17 }
 0x425   :  { %v335_v19 = vpop.xlane.xlu1 %334 }
 0x426   :  { %v338_v20 = vmul.f32 %v336_v18, %v336_v18  ;;  %v337_v21 = vmul.f32 0.0078125, %v335_v19  ;;  %v340_v24 = vsub.f32 %v1008_v32, %v336_v18 }
 0x428   :  { %v339_v22 = vsub.f32 %v337_v21, %v338_v20 }
 0x42a   :  { %v341_v23 = vadd.f32 1e-05, %v339_v22 }
 0x42c   :  { %753 = vrsqrt.f32 %v341_v23 }
 0x439   :  { %v754_v25 = vpop.eup %753 }
 0x43a   :  { %v343_v27 = vmul.f32 %v754_v25, %v340_v24 }
 0x43c   :  { %v344_v29 = vmul.f32 %v343_v27, %v329_v26 }
 0x43e   :  { %v345_v30 = vadd.f32 %v344_v29, %v330_v28 }
 0x440   :  { %477 = vmatmul.mubr.f32.vlgmr.msra.gmra.mxu0 %v345_v30  ;;  %725 = vmatmul.mubr.f32.vlgmr.msra.gmra.mxu1 %v345_v30 }
 0x500   :  { %v478_v36 = vpop.f32.mrf.mxu0  ;;  %v549_v32 = vpop.f32.mrf.mxu1 }
 0x501   :  { %v479_v37 = vadd.f32 %v478_v36, %v400_v31  ;;  %v550_v38 = vadd.f32 %v549_v32, %v408_v33 }
 0x502   :  { %v480_v39 = vpop.f32.mrf.mxu0  ;;  %v726_v40 = vpop.f32.mrf.mxu1 }
 0x503   :  { %553 = vst [vmem:[#allocation10] sm:$0xff] %v479_v37  ;;  %v559_v41 = vand.u32 2147483647, %v550_v38  ;;  %v481_v42 = vadd.f32 %v480_v39, %v404_v35 }
 0x505   :  { %v561_v43 = vsub.f32 0.0, %v559_v41  ;;  %v558_v44 = vand.u32 2147483647, %v481_v42  ;;  %555 = vst.msk [vmem:[#allocation10 + $0x8] sm:$0xff] %vm554_vm3, %v481_v42 }
 0x507   :  { %v564_v7 = vmul.f32 1.442695, %v561_v43  ;;  %v560_v45 = vsub.f32 0.0, %v558_v44 }
 0x509   :  { %755 = vpow2.f32 %v564_v7  ;;  %v562_v12 = vmul.f32 1.442695, %v560_v45 }
 0x50b   :  { %757 = vpow2.f32 %v562_v12 }
 0x516   :  { %v756_v6 = vpop.eup %755 }
 0x517   :  { %v575_v10 = vadd.f32 1.0, %v756_v6  ;;  %v578_v48 = vmul.f32 -0.5, %v756_v6  ;;  %v581_v51 = vand.u32 2147483647, %v756_v6 }
 0x518   :  { %v758_v46 = vpop.eup %757 }
 0x519   :  { %759 = vlog2.f32 %v575_v10  ;;  %v566_v47 = vadd.f32 1.0, %v758_v46  ;;  %v569_v49 = vmul.f32 -0.5, %v758_v46  ;;  %v579_v50 = vadd.f32 1.0, %v578_v48 }
 0x51b   :  { %761 = vlog2.f32 %v566_v47 }
 0x51c   :  { %854 = shalt.err (!%p851_p10)
}
 0x51d   :  { %607 = dma.vmem_to_hbm [thread:$0]  %s605_s1, 256, %s1047_s6, [#allocation4]   ;;  %v570_v52 = vadd.f32 1.0, %v569_v49  ;;  %v572_v54 = vand.u32 2147483647, %v758_v46  ;;  %v580_v56 = vmul.f32 %v756_v6, %v579_v50  ;;  %v557_v58 = vmax.f32 %v550_v38, 0.0 }
 0x51e   :  { %vm582_vm4 = vcmp.lt.f32.partialorder %v581_v51, 0.0004427343  ;;  %v556_v62 = vmax.f32 %v481_v42, 0.0  ;;  %s908_s28 = smov 121   ;;  %s909_s6 = smov [#allocation11]   ;;  %vm592_vm6 = vcmask 990208  }
 0x51f   :  { %v571_v61 = vmul.f32 %v758_v46, %v570_v52  ;;  %vm573_vm5 = vcmp.lt.f32.partialorder %v572_v54, 0.0004427343  ;;  %s614_s29 = sshll.u32 %s909_s6, 4  ;;  %s615_s29 = int_to_ptr.vmem [resolvable:$true] %s614_s29 }
 0x520   :  { %s863_s30 = scalar_lea.vmem %s615_s29, 256  ;;  %p868_p12 = scmp.lt.s32.totalorder %s615_s29, %s615_s29 }
 0x521   :  { %p864_p11 = scmp.ne.s32.totalorder %s615_s29, %s863_s30  ;;  %p869_p13 = scmp.lt.s32.totalorder %s863_s30, %s863_s30 }
 0x523   :  { %p870_p0 = por %p869_p13, %p868_p12 }
 0x525   :  { %p871_p1 = pnand %p870_p0, %p864_p11 }
 0x526   :  { %v760_v53 = vpop.eup %759 }
 0x527   :  { %v577_v55 = vmul.f32 0.6931472, %v760_v53 }
 0x528   :  { %v762_v57 = vpop.eup %761 }
 0x529   :  { %v583_v59 = vsel %vm582_vm4, %v580_v56, %v577_v55  ;;  %v568_v60 = vmul.f32 0.6931472, %v762_v57 }
 0x52a   :  { %v585_v63 = vadd.f32 %v583_v59, %v557_v58 }
 0x52b   :  { %v574_v0 = vsel %vm573_vm5, %v571_v61, %v568_v60 }
 0x52c   :  { %590 = vrot.lane.b32.xlu1 %v585_v63, %s908_s28  ;;  %v584_v1 = vadd.f32 %v574_v0, %v556_v62 }
 0x52e   :  { %588 = vrot.lane.b32.xlu0 %v584_v1, %s908_s28 }
 0x59e   :  { %v591_v2 = vpop.permute.xlu1 %590 }
 0x59f   :  { %597 = vst.msk [vmem:[#allocation11 + $0x8] sm:$0xff] %vm554_vm3, %v591_v2 }
 0x5a0   :  { %v589_v3 = vpop.permute.xlu0 %588 }
 0x5a1   :  { %v593_v4 = vsel %vm592_vm6, %v589_v3, %v591_v2 }
 0x5a2   :  { %596 = vst [vmem:[#allocation11] sm:$0xff] %v593_v4 }
 0x5a3   :  { %874 = shalt.err (!%p871_p1)
}
 0x5a4   :  { %617 = dma.vmem_to_hbm [thread:$0]  %s615_s29, 256, %s1048_s7, [#allocation12]  }
 0x5a5   :  { %889 = dma.done.wait [#allocation4], 256  }
 0x5a6   :  { %890 = vsyncadd [#allocation4], 4294967040 }
 0x5a7   :  { %891 = dma.done.wait [#allocation12], 256  }
 0x5a8   :  { %892 = vsyncadd [#allocation12], 4294967040 }
 0x5a9   :  { %624 = vsyncpa [#allocation3], 1 }
 0x5aa   :  { %625 = vsyncpa [#allocation6], 1 }
 0x5ab   :  { %626 = vsyncpa [#allocation9], 1 }
 0x5ac   :  { %627 = vsyncpa [#allocation4], 1 }
 0x5ad   :  { %628 = vsyncpa [#allocation12], 1 }

</bundles_post_ra>
